<compile_context>
chip_gen: v7x
topology: tpu7x:2x2x1
jax: 0.10.0
libtpu: 0.0.40
codegen_flags: <defaults>
</compile_context>

<pallas_src>
import jax
import jax.numpy as jnp
from jax.experimental import pallas as pl
from jax.experimental.pallas import tpu as pltpu

_MiB = 1024 * 1024


def _h_sigmoid_kernel(x_ref, o_ref):
    x = x_ref[...]
    # clamp(x + 3, 0, 6) * (1/6) in the native dtype (weak scalars keep dtype).
    o_ref[...] = (jnp.clip(x + 3.0, 0.0, 6.0) * (1.0 / 6.0)).astype(o_ref.dtype)


def _vmem_budget():
    """(per-buffer block bytes, vmem_limit_bytes), generation aware.

    v5e/v6e have 128 MiB physical VMEM -> 8 MiB blocks, 48 MiB scoped limit.
    v7x has only 64 MiB -> 4 MiB blocks, 32 MiB scoped limit (also the safe
    default when the generation can't be determined).
    """
    try:
        kind = jax.devices()[0].device_kind.lower()
    except Exception:  # pragma: no cover - detection is best-effort only
        kind = ""
    if ("v5" in kind) or ("v6" in kind):
        return 8 * _MiB, 48 * _MiB
    return 4 * _MiB, 32 * _MiB


def _choose_width(n_elem: int):
    """Widest lane-dense last dim (multiple of 128) that divides n_elem."""
    for w in (2048, 1024, 512, 256, 128):
        if n_elem % w == 0:
            return w
    return None


def _h_sigmoid_jnp(x):
    # Used only for the < 128-element ragged tail (negligible work).
    return jnp.clip(x + 3.0, 0.0, 6.0) * (1.0 / 6.0)


def h_sigmoid(x: jax.Array, *, donate: bool = False) -> jax.Array:
    """Elementwise hard-sigmoid on an NCHW (or any-shape) tensor.

    donate=True aliases the input buffer to the output (PyTorch inplace=True
    analogue); only enable it when the caller no longer needs `x`.
    """
    orig_shape = x.shape
    dtype = x.dtype
    n_elem = x.size
    itemsize = jnp.dtype(dtype).itemsize

    x_flat = jnp.reshape(x, (-1,))

    # 128-aligned bulk goes through the Pallas kernel; the tiny tail (< 128
    # elements) is handled with plain jnp — avoids a full-tensor pad/copy.
    n_bulk = (n_elem // 128) * 128
    if n_bulk == 0:
        # Degenerate < 128-element input: not worth a pallas_call.
        return jnp.reshape(_h_sigmoid_jnp(x_flat), orig_shape)

    w = _choose_width(n_bulk)  # n_bulk is a multiple of 128, so w >= 128
    n_rows = n_bulk // w
    bulk_bytes = n_bulk * itemsize

    block_bytes, vmem_limit = _vmem_budget()

    # Rows per block: ~block_bytes per buffer, multiple of 8 sublanes.
    tile_rows = max(8, (block_bytes // (w * itemsize)) // 8 * 8)

    if bulk_bytes > 1 * _MiB:
        # Guarantee >= 4 grid steps: keeps DMA/compute pipelining active and
        # lets v7x's megacore split the grid across both TensorCores.
        cap = max(8, (pl.cdiv(n_rows, 4) // 8) * 8)
        tile_rows = min(tile_rows, cap)

    if tile_rows >= n_rows:
        tile_rows = n_rows  # single full-extent block (small inputs; legal)

    grid = (pl.cdiv(n_rows, tile_rows),)  # ragged final block clipped by Pallas

    x2d = jnp.reshape(x_flat[:n_bulk], (n_rows, w))

    extra_kwargs = {}
    if donate:
        extra_kwargs["input_output_aliases"] = {0: 0}

    out2d = pl.pallas_call(
        _h_sigmoid_kernel,
        out_shape=jax.ShapeDtypeStruct((n_rows, w), dtype),
        grid=grid,
        in_specs=[pl.BlockSpec((tile_rows, w), lambda i: (i, 0))],
        out_specs=pl.BlockSpec((tile_rows, w), lambda i: (i, 0)),
        compiler_params=pltpu.CompilerParams(
            dimension_semantics=("parallel",),
            vmem_limit_bytes=vmem_limit,
        ),
        **extra_kwargs,
    )(x2d)

    out_flat = jnp.reshape(out2d, (-1,))
    if n_bulk != n_elem:
        tail_out = _h_sigmoid_jnp(x_flat[n_bulk:])
        out_flat = jnp.concatenate([out_flat, tail_out])
    return jnp.reshape(out_flat, orig_shape)


def _h_sigmoid_ref(x):
    return jnp.clip(x.astype(jnp.float32) + 3.0, 0.0, 6.0) / 6.0


if __name__ == "__main__":
    key = jax.random.PRNGKey(0)
    k0, k1, k2, k3 = jax.random.split(key, 4)

    # NCHW input, matching PyTorch conv conventions.
    x = jax.random.normal(k0, (2, 4, 16, 16), dtype=jnp.float32) * 4.0
    y = jax.block_until_ready(h_sigmoid(x))
    assert y.shape == x.shape
    assert jnp.allclose(y, _h_sigmoid_ref(x), atol=1e-6, rtol=1e-6), "mismatch (aligned f32)"

    # Ragged (numel not a multiple of 128) bulk+tail path.
    x2 = jax.random.normal(k1, (2, 3, 5, 7), dtype=jnp.float32) * 4.0
    y2 = jax.block_until_ready(h_sigmoid(x2))
    assert y2.shape == x2.shape
    assert jnp.allclose(y2, _h_sigmoid_ref(x2), atol=1e-6, rtol=1e-6), "mismatch (ragged)"

    # bf16 path (kernel computes in bf16; compare against f32 ref with slack).
    x3 = (jax.random.normal(k2, (2, 4, 16, 16), dtype=jnp.float32) * 4.0).astype(jnp.bfloat16)
    y3 = jax.block_until_ready(h_sigmoid(x3))
    assert y3.dtype == jnp.bfloat16 and y3.shape == x3.shape
    assert jnp.allclose(y3.astype(jnp.float32), _h_sigmoid_ref(x3), atol=2e-2), "mismatch (bf16)"

    # Moderate size (> 1 MiB) to exercise the multi-step pipelined grid.
    x4 = jax.random.normal(k3, (2, 32, 64, 64), dtype=jnp.float32) * 4.0
    y4 = jax.block_until_ready(h_sigmoid(x4))
    assert y4.shape == x4.shape
    assert jnp.allclose(y4, _h_sigmoid_ref(x4), atol=1e-6, rtol=1e-6), "mismatch (multi-block)"

    print("KERNEL_OK")
</pallas_src>

<mosaic_0001>
module attributes {stable_mosaic.version = 11 : i64} {
  func.func @_h_sigmoid_kernel(%arg0: i32, %arg1: memref<1x2048xf32, #tpu.memory_space<vmem>>, %arg2: memref<1x2048xf32, #tpu.memory_space<vmem>>) attributes {dimension_semantics = [#tpu.dimension_semantics<parallel>], iteration_bounds = array<i64: 1>, scalar_prefetch = 0 : i64, scratch_operands = 0 : i64, tpu.core_type = #tpu.core_type<tc>, window_params = [{transform_indices = @transform_0, window_bounds = array<i64: 1, 2048>}, {transform_indices = @transform_1, window_bounds = array<i64: 1, 2048>}]} {
    %c0 = arith.constant 0 : index
    %c0_0 = arith.constant 0 : index
    %0 = vector.load %arg1[%c0, %c0_0] : memref<1x2048xf32, #tpu.memory_space<vmem>>, vector<1x2048xf32>
    %cst = arith.constant 3.000000e+00 : f32
    %1 = vector.broadcast %cst : f32 to vector<1x2048xf32>
    %2 = arith.addf %0, %1 : vector<1x2048xf32>
    %cst_1 = arith.constant 0.000000e+00 : f32
    %cst_2 = arith.constant 6.000000e+00 : f32
    %3 = vector.broadcast %cst_1 : f32 to vector<1x2048xf32>
    %4 = arith.maximumf %3, %2 : vector<1x2048xf32>
    %5 = vector.broadcast %cst_2 : f32 to vector<1x2048xf32>
    %6 = arith.minimumf %5, %4 : vector<1x2048xf32>
    %cst_3 = arith.constant 0.166666672 : f32
    %7 = vector.broadcast %cst_3 : f32 to vector<1x2048xf32>
    %8 = arith.mulf %6, %7 : vector<1x2048xf32>
    %c0_4 = arith.constant 0 : index
    %c0_5 = arith.constant 0 : index
    %9 = vector.load %arg2[%c0_4, %c0_5] : memref<1x2048xf32, #tpu.memory_space<vmem>>, vector<1x2048xf32>
    tpu.vector_store %arg2[%c0_4, %c0_5], %8 {strides = array<i32>} : memref<1x2048xf32, #tpu.memory_space<vmem>>, vector<1x2048xf32>,
    return
  }
  func.func @transform_0(%arg0: i32) -> (i32, i32) {
    %c0_i32 = arith.constant 0 : i32
    %c0_i32_0 = arith.constant 0 : i32
    return %arg0, %c0_i32 : i32, i32
  }
  func.func @transform_1(%arg0: i32) -> (i32, i32) {
    %c0_i32 = arith.constant 0 : i32
    %c0_i32_0 = arith.constant 0 : i32
    return %arg0, %c0_i32 : i32, i32
  }
}

</mosaic_0001>

<bundles_post_ra>
// kernel: tpu_custom_call.1
= control target key start
LH: loop header
LB: loop body
LE: loop exit
PB: predicated region body
PF: predicated region fallthrough
CT: control target
= control target key end

     0   :  { %6 = vsyncpa [#allocation3], 0  ;;  %s134_s0 = inlined_call_operand.hbm [shape: f32[1,2048], index: 0, kind: input, shape index: {}]   ;;  %s135_s1 = inlined_call_operand.hbm [shape: f32[1,2048], index: 1, kind: output, shape index: {}]  }
   0x1   :  { %7 = vsyncpa [#allocation4], 0  ;;  %s98_s6 = smov [#allocation2]   ;;  %s50_s10 = scalar_lea.hbm %s134_s0, 256 }
   0x2   :  { %s14_s7 = sshll.u32 %s98_s6, 4  ;;  %p51_p0 = scmp.ne.s32.totalorder %s134_s0, %s50_s10  ;;  %s15_s7 = int_to_ptr.vmem [resolvable:$true] %s14_s7 }
   0x3   :  { %p54_p1 = scmp.lt.u32.totalorder %s50_s10, %s134_s0 }
   0x5   :  { %p56_p2 = pnand %p54_p1, %p51_p0 }
   0x7   :  { %59 = shalt.err (!%p56_p2)
}
   0x8   :  { %s60_s15 = scalar_lea.vmem %s15_s7, 256  ;;  %p65_p4 = scmp.lt.s32.totalorder %s15_s7, %s15_s7 }
   0x9   :  { %p61_p3 = scmp.ne.s32.totalorder %s15_s7, %s60_s15  ;;  %p66_p5 = scmp.lt.s32.totalorder %s60_s15, %s60_s15 }
   0xb   :  { %p67_p6 = por %p66_p5, %p65_p4 }
   0xd   :  { %p68_p7 = pnand %p67_p6, %p61_p3 }
   0xf   :  { %71 = shalt.err (!%p68_p7)
}
  0x10   :  { %17 = dma.hbm_to_vmem [thread:$0]  %s134_s0, 256, %s15_s7, [#allocation3]  }
  0x11   :  { %94 = dma.done.wait [#allocation3], 256  }
  0x12   :  { %95 = vsyncadd [#allocation3], 4294967040  ;;  %v21_v0 = vld [vmem:[#allocation2] sm:$0xff]  ;;  %v22_v1 = vld [vmem:[#allocation2 + $0x8] sm:$0xff]  ;;  %s99_s18 = smov [#allocation5]  }
  0x13   :  { %v23_v2 = vadd.f32 3.0, %v21_v0  ;;  %v24_v3 = vadd.f32 3.0, %v22_v1  ;;  %s39_s19 = sshll.u32 %s99_s18, 4  ;;  %s40_s19 = int_to_ptr.vmem [resolvable:$true] %s39_s19 }
  0x14   :  { %s72_s20 = scalar_lea.vmem %s40_s19, 256  ;;  %p77_p9 = scmp.lt.s32.totalorder %s40_s19, %s40_s19 }
  0x15   :  { %v25_v4 = vmax.f32 %v23_v2, 0.0  ;;  %v26_v5 = vmax.f32 %v24_v3, 0.0  ;;  %p73_p8 = scmp.ne.s32.totalorder %s40_s19, %s72_s20  ;;  %p78_p10 = scmp.lt.s32.totalorder %s72_s20, %s72_s20 }
  0x17   :  { %v27_v6 = vmin.f32 %v25_v4, 6.0  ;;  %v28_v7 = vmin.f32 %v26_v5, 6.0  ;;  %p79_p11 = por %p78_p10, %p77_p9 }
  0x19   :  { %v29_v8 = vmul.f32 0.16666667, %v27_v6  ;;  %v30_v9 = vmul.f32 0.16666667, %v28_v7  ;;  %p80_p12 = pnand %p79_p11, %p73_p8 }
  0x1b   :  { %31 = vst [vmem:[#allocation5] sm:$0xff] %v29_v8  ;;  %32 = vst [vmem:[#allocation5 + $0x8] sm:$0xff] %v30_v9 }
  0x1c   :  { %83 = shalt.err (!%p80_p12)
}
  0x1d   :  { %s84_s22 = scalar_lea.hbm %s135_s1, 256 }
  0x1e   :  { %p85_p13 = scmp.ne.s32.totalorder %s135_s1, %s84_s22  ;;  %p88_p0 = scmp.lt.u32.totalorder %s84_s22, %s135_s1 }
  0x20   :  { %p90_p1 = pnand %p88_p0, %p85_p13 }
  0x22   :  { %93 = shalt.err (!%p90_p1)
}
  0x23   :  { %42 = dma.vmem_to_hbm [thread:$0]  %s40_s19, 256, %s135_s1, [#allocation4]  }
  0x24   :  { %96 = dma.done.wait [#allocation4], 256  }
  0x25   :  { %97 = vsyncadd [#allocation4], 4294967040 }
  0x26   :  { %46 = vsyncpa [#allocation3], 1 }
  0x27   :  { %47 = vsyncpa [#allocation4], 1 }

</bundles_post_ra>
